<compile_context>
chip_gen: v5e
topology: v5e:2x2
jax: 0.10.0
libtpu: 0.0.40
codegen_flags: <defaults>
</compile_context>

<pallas_src>
import jax
import jax.numpy as jnp
from jax.experimental import pallas as pl
from jax.experimental.pallas import tpu as pltpu


def lstm_cell_kernel(x_ref, state_ref, wx_ref, wh_ref, b_ref, out_ref):
    """One LSTM-cell step for a batch tile.

    x_ref:     [bB, D]            input features
    state_ref: [bB, 2*half]       [h | c] old state
    wx_ref:    [D,    4*half]     x-part of packed weights, gates [f|i|g|o] on lanes
    wh_ref:    [half, 4*half]     h-part of packed weights
    b_ref:     [1,    4*half]     packed bias (f32)
    out_ref:   [bB, 2*half]       [h_new | c_new]

    f/i/o weight columns and biases are pre-scaled by 0.5 in the wrapper so
    sigmoid(z) = 0.5 * tanh(z/2) + 0.5 only needs the affine tail here.
    """
    half = out_ref.shape[1] // 2
    mm_dtype = wx_ref.dtype

    x = x_ref[...]
    h = state_ref[:, :half]                          # old hidden state (static slice)
    c = state_ref[:, half:].astype(jnp.float32)      # old memory cell

    # Two K-aligned MXU pushes against the resident weights; f32 accumulation.
    gates = jnp.dot(x.astype(mm_dtype), wx_ref[...],
                    preferred_element_type=jnp.float32)
    gates = gates + jnp.dot(h.astype(mm_dtype), wh_ref[...],
                            preferred_element_type=jnp.float32)
    gates = gates + b_ref[...]                       # broadcast bias add in f32

    # Single wide EUP tanh over all four gates.
    t = jnp.tanh(gates)
    f = 0.5 * t[:, 0 * half:1 * half] + 0.5          # forget gate  (sigmoid)
    i = 0.5 * t[:, 1 * half:2 * half] + 0.5          # input gate   (sigmoid)
    g = t[:, 2 * half:3 * half]                      # candidate memory (tanh)
    o = 0.5 * t[:, 3 * half:4 * half] + 0.5          # output gate  (sigmoid)

    c_new = f * c + i * g
    h_new = o * jnp.tanh(c_new)

    if half % 128 == 0:
        # Lane-dense, unmasked stores; no concat temporary.
        out_ref[:, :half] = h_new.astype(out_ref.dtype)
        out_ref[:, half:] = c_new.astype(out_ref.dtype)
    else:
        # half < 128: a single full-width store beats two masked half-stores.
        out_ref[...] = jnp.concatenate([h_new, c_new], axis=1).astype(out_ref.dtype)


def pack_lstm_weights(w_f, b_f, w_i, b_i, w_m, b_m, w_o, b_o, input_size,
                      *, matmul_dtype=jnp.float32):
    """Pack per-gate parameters ONCE (hoist out of the per-timestep path).

    Returns (w_x [D,4*half], w_h [half,4*half], bias [1,4*half]) with gates
    ordered [f|i|g|o] on the lane axis.  f/i/o columns & biases are pre-scaled
    by 0.5 for the in-kernel tanh-based sigmoid.  Bias stays f32 (added
    post-matmul), the weight matrices are cast to `matmul_dtype`.
    """
    W = jnp.concatenate([0.5 * w_f, 0.5 * w_i, w_m, 0.5 * w_o], axis=1)
    bias = jnp.concatenate([0.5 * b_f, 0.5 * b_i, b_m, 0.5 * b_o], axis=1)
    w_x = W[:input_size, :].astype(matmul_dtype)
    w_h = W[input_size:, :].astype(matmul_dtype)
    return w_x, w_h, bias.astype(jnp.float32)


def lstm_cell_pallas(state_old, x, w_x, w_h, bias, *, block_b=None):
    """state_old: [B, 2*half], x: [B, D], packed w_x/w_h/bias from
    pack_lstm_weights()  ->  state_new: [B, 2*half]."""
    B, H = state_old.shape
    half = H // 2
    D = x.shape[1]
    four_h = 4 * half
    assert w_x.shape == (D, four_h)
    assert w_h.shape == (half, four_h)
    assert bias.shape == (1, four_h)

    if block_b is None:
        if B <= 16:
            block_b = B
        else:
            # >=2 grid steps (lets "parallel" use both v7x TensorCores), rows
            # rounded to a sublane multiple, capped at 256 (MXU M / VMEM).
            block_b = min(256, ((B + 1) // 2 + 7) // 8 * 8)
    grid_b = pl.cdiv(B, block_b)   # partial tail block handled by Pallas padding

    itemsize = lambda a: int(a.dtype.itemsize)
    cost = pl.CostEstimate(
        flops=2 * B * (D + half) * four_h,
        transcendentals=B * (four_h + half),
        bytes_accessed=int(x.size) * itemsize(x)
        + int(state_old.size) * itemsize(state_old)
        + int(w_x.size) * itemsize(w_x)
        + int(w_h.size) * itemsize(w_h)
        + int(bias.size) * itemsize(bias)
        + B * H * itemsize(state_old),
    )

    return pl.pallas_call(
        lstm_cell_kernel,
        out_shape=jax.ShapeDtypeStruct((B, H), state_old.dtype),
        grid=(grid_b,),
        in_specs=[
            pl.BlockSpec((block_b, D), lambda b: (b, 0)),       # x tile
            pl.BlockSpec((block_b, H), lambda b: (b, 0)),       # state tile
            pl.BlockSpec((D, four_h), lambda b: (0, 0)),        # w_x resident
            pl.BlockSpec((half, four_h), lambda b: (0, 0)),     # w_h resident
            pl.BlockSpec((1, four_h), lambda b: (0, 0)),        # bias resident
        ],
        out_specs=pl.BlockSpec((block_b, H), lambda b: (b, 0)),
        compiler_params=pltpu.CompilerParams(
            dimension_semantics=("parallel",)),                 # batch-parallel
        cost_estimate=cost,
    )(x, state_old, w_x, w_h, bias)


def lstm_cell_ref(state_old, x, w_f, b_f, w_i, b_i, w_m, b_m, w_o, b_o):
    """Pure-JAX reference mirroring the torch forward exactly."""
    half = w_f.shape[1]
    h = state_old[:, :half]
    c = state_old[:, half:2 * half]
    xh = jnp.concatenate([x, h], axis=1)
    f = jax.nn.sigmoid(xh @ w_f + b_f)
    i = jax.nn.sigmoid(xh @ w_i + b_i)
    g = jnp.tanh(xh @ w_m + b_m)
    c_new = f * c + i * g
    o = jax.nn.sigmoid(xh @ w_o + b_o)
    h_new = o * jnp.tanh(c_new)
    return jnp.concatenate([h_new, c_new], axis=1)


if __name__ == "__main__":
    # Shapes consistent with the module: hidden_state_size H = 64 -> half = 32,
    # input_size D = 16 -> XH = 48, batch B = 8.
    B, D, H = 8, 16, 64
    half = H // 2
    XH = D + half

    key = jax.random.PRNGKey(0)
    ks = jax.random.split(key, 10)
    scale = 1.0 / jnp.sqrt(jnp.float32(XH))   # variance-scaling init, Var[W]=1/n

    x = jax.random.normal(ks[0], (B, D), dtype=jnp.float32)
    state_old = jax.random.normal(ks[1], (B, H), dtype=jnp.float32)
    w_f = jax.random.normal(ks[2], (XH, half), dtype=jnp.float32) * scale
    w_i = jax.random.normal(ks[3], (XH, half), dtype=jnp.float32) * scale
    w_m = jax.random.normal(ks[4], (XH, half), dtype=jnp.float32) * scale
    w_o = jax.random.normal(ks[5], (XH, half), dtype=jnp.float32) * scale
    # Module inits biases to zero; use small nonzero biases to exercise the add.
    b_f = 0.1 * jax.random.normal(ks[6], (1, half), dtype=jnp.float32)
    b_i = 0.1 * jax.random.normal(ks[7], (1, half), dtype=jnp.float32)
    b_m = 0.1 * jax.random.normal(ks[8], (1, half), dtype=jnp.float32)
    b_o = 0.1 * jax.random.normal(ks[9], (1, half), dtype=jnp.float32)

    ref = lstm_cell_ref(state_old, x, w_f, b_f, w_i, b_i, w_m, b_m, w_o, b_o)

    # --- f32 matmul path (parity check) ---------------------------------
    wx32, wh32, bias32 = pack_lstm_weights(
        w_f, b_f, w_i, b_i, w_m, b_m, w_o, b_o, D, matmul_dtype=jnp.float32)
    out = jax.block_until_ready(lstm_cell_pallas(state_old, x, wx32, wh32, bias32))
    assert out.shape == (B, H)
    assert jnp.allclose(out, ref, atol=1e-4, rtol=1e-4), \
        float(jnp.max(jnp.abs(out - ref)))

    # --- multi-step grid + non-divisible batch (tail block) --------------
    B2 = 40
    x2 = jax.random.normal(jax.random.PRNGKey(1), (B2, D), dtype=jnp.float32)
    s2 = jax.random.normal(jax.random.PRNGKey(2), (B2, H), dtype=jnp.float32)
    out2 = jax.block_until_ready(
        lstm_cell_pallas(s2, x2, wx32, wh32, bias32, block_b=16))   # grid=(3,), padded tail
    ref2 = lstm_cell_ref(s2, x2, w_f, b_f, w_i, b_i, w_m, b_m, w_o, b_o)
    assert jnp.allclose(out2, ref2, atol=1e-4, rtol=1e-4), \
        float(jnp.max(jnp.abs(out2 - ref2)))

    # --- bf16 MXU operands (production fast path), looser tolerance ------
    wx16, wh16, bias16 = pack_lstm_weights(
        w_f, b_f, w_i, b_i, w_m, b_m, w_o, b_o, D, matmul_dtype=jnp.bfloat16)
    out_bf16 = jax.block_until_ready(lstm_cell_pallas(state_old, x, wx16, wh16, bias16))
    assert jnp.allclose(out_bf16, ref, atol=5e-2, rtol=5e-2), \
        float(jnp.max(jnp.abs(out_bf16 - ref)))

    print("KERNEL_OK")
</pallas_src>

<mosaic_0001>
module attributes {stable_mosaic.version = 11 : i64} {
  func.func @lstm_cell_kernel(%arg0: i32, %arg1: memref<8x16xf32, #tpu.memory_space<vmem>>, %arg2: memref<8x64xf32, #tpu.memory_space<vmem>>, %arg3: memref<16x128xf32, #tpu.memory_space<vmem>>, %arg4: memref<32x128xf32, #tpu.memory_space<vmem>>, %arg5: memref<1x128xf32, #tpu.memory_space<vmem>>, %arg6: memref<8x64xf32, #tpu.memory_space<vmem>>) attributes {dimension_semantics = [#tpu.dimension_semantics<parallel>], iteration_bounds = array<i64: 1>, scalar_prefetch = 0 : i64, scratch_operands = 0 : i64, tpu.core_type = #tpu.core_type<tc>, window_params = [{transform_indices = @transform_0, window_bounds = array<i64: 8, 16>}, {transform_indices = @transform_1, window_bounds = array<i64: 8, 64>}, {pipeline_mode = #tpu.pipeline_mode<synchronous>, transform_indices = @transform_2, window_bounds = array<i64: 16, 128>}, {pipeline_mode = #tpu.pipeline_mode<synchronous>, transform_indices = @transform_3, window_bounds = array<i64: 32, 128>}, {pipeline_mode = #tpu.pipeline_mode<synchronous>, transform_indices = @transform_4, window_bounds = array<i64: 1, 128>}, {transform_indices = @transform_5, window_bounds = array<i64: 8, 64>}]} {
    %c0 = arith.constant 0 : index
    %c0_0 = arith.constant 0 : index
    %0 = vector.load %arg1[%c0, %c0_0] : memref<8x16xf32, #tpu.memory_space<vmem>>, vector<8x16xf32>
    %c0_1 = arith.constant 0 : index
    %c0_2 = arith.constant 0 : index
    %1 = vector.load %arg2[%c0_1, %c0_2] : memref<8x64xf32, #tpu.memory_space<vmem>>, vector<8x32xf32>
    %c0_3 = arith.constant 0 : index
    %c32 = arith.constant 32 : index
    %2 = vector.load %arg2[%c0_3, %c32] : memref<8x64xf32, #tpu.memory_space<vmem>>, vector<8x32xf32>
    %c0_4 = arith.constant 0 : index
    %c0_5 = arith.constant 0 : index
    %3 = vector.load %arg3[%c0_4, %c0_5] : memref<16x128xf32, #tpu.memory_space<vmem>>, vector<16x128xf32>
    %cst = arith.constant dense<0.000000e+00> : vector<8x128xf32>
    %4 = tpu.matmul %0, %3, %cst {dimension_numbers = #tpu.dot_dimension_numbers<[1], [0], [0], [1], [0, 0, 1, 1], [], []>} : vector<8x16xf32>, vector<16x128xf32>, vector<8x128xf32> -> vector<8x128xf32>
    %c0_6 = arith.constant 0 : index
    %c0_7 = arith.constant 0 : index
    %5 = vector.load %arg4[%c0_6, %c0_7] : memref<32x128xf32, #tpu.memory_space<vmem>>, vector<32x128xf32>
    %cst_8 = arith.constant dense<0.000000e+00> : vector<8x128xf32>
    %6 = tpu.matmul %1, %5, %cst_8 {dimension_numbers = #tpu.dot_dimension_numbers<[1], [0], [0], [1], [0, 0, 1, 1], [], []>} : vector<8x32xf32>, vector<32x128xf32>, vector<8x128xf32> -> vector<8x128xf32>
    %7 = arith.addf %4, %6 : vector<8x128xf32>
    %c0_9 = arith.constant 0 : index
    %c0_10 = arith.constant 0 : index
    %8 = vector.load %arg5[%c0_9, %c0_10] : memref<1x128xf32, #tpu.memory_space<vmem>>, vector<1x128xf32>
    %9 = vector.broadcast %8 : vector<1x128xf32> to vector<8x128xf32>
    %10 = arith.addf %7, %9 : vector<8x128xf32>
    %11 = math.tanh %10 : vector<8x128xf32>
    %12 = vector.extract_strided_slice %11 {offsets = [0, 0], sizes = [8, 32], strides = [1, 1]} : vector<8x128xf32> to vector<8x32xf32>
    %cst_11 = arith.constant 5.000000e-01 : f32
    %13 = vector.broadcast %cst_11 : f32 to vector<8x32xf32>
    %14 = arith.mulf %13, %12 : vector<8x32xf32>
    %cst_12 = arith.constant 5.000000e-01 : f32
    %15 = vector.broadcast %cst_12 : f32 to vector<8x32xf32>
    %16 = arith.addf %14, %15 : vector<8x32xf32>
    %17 = vector.extract_strided_slice %11 {offsets = [0, 32], sizes = [8, 32], strides = [1, 1]} : vector<8x128xf32> to vector<8x32xf32>
    %cst_13 = arith.constant 5.000000e-01 : f32
    %18 = vector.broadcast %cst_13 : f32 to vector<8x32xf32>
    %19 = arith.mulf %18, %17 : vector<8x32xf32>
    %cst_14 = arith.constant 5.000000e-01 : f32
    %20 = vector.broadcast %cst_14 : f32 to vector<8x32xf32>
    %21 = arith.addf %19, %20 : vector<8x32xf32>
    %22 = vector.extract_strided_slice %11 {offsets = [0, 64], sizes = [8, 32], strides = [1, 1]} : vector<8x128xf32> to vector<8x32xf32>
    %23 = vector.extract_strided_slice %11 {offsets = [0, 96], sizes = [8, 32], strides = [1, 1]} : vector<8x128xf32> to vector<8x32xf32>
    %cst_15 = arith.constant 5.000000e-01 : f32
    %24 = vector.broadcast %cst_15 : f32 to vector<8x32xf32>
    %25 = arith.mulf %24, %23 : vector<8x32xf32>
    %cst_16 = arith.constant 5.000000e-01 : f32
    %26 = vector.broadcast %cst_16 : f32 to vector<8x32xf32>
    %27 = arith.addf %25, %26 : vector<8x32xf32>
    %28 = arith.mulf %16, %2 : vector<8x32xf32>
    %29 = arith.mulf %21, %22 : vector<8x32xf32>
    %30 = arith.addf %28, %29 : vector<8x32xf32>
    %31 = math.tanh %30 : vector<8x32xf32>
    %32 = arith.mulf %27, %31 : vector<8x32xf32>
    %33 = tpu.concatenate %32, %30 in 1 : vector<8x32xf32>, vector<8x32xf32> -> vector<8x64xf32>
    %c0_17 = arith.constant 0 : index
    %c0_18 = arith.constant 0 : index
    %34 = vector.load %arg6[%c0_17, %c0_18] : memref<8x64xf32, #tpu.memory_space<vmem>>, vector<8x64xf32>
    tpu.vector_store %arg6[%c0_17, %c0_18], %33 {strides = array<i32>} : memref<8x64xf32, #tpu.memory_space<vmem>>, vector<8x64xf32>,
    return
  }
  func.func @transform_0(%arg0: i32) -> (i32, i32) {
    %c0_i32 = arith.constant 0 : i32
    %c0_i32_0 = arith.constant 0 : i32
    return %arg0, %c0_i32 : i32, i32
  }
  func.func @transform_1(%arg0: i32) -> (i32, i32) {
    %c0_i32 = arith.constant 0 : i32
    %c0_i32_0 = arith.constant 0 : i32
    return %arg0, %c0_i32 : i32, i32
  }
  func.func @transform_2(%arg0: i32) -> (i32, i32) {
    %c0_i32 = arith.constant 0 : i32
    %c0_i32_0 = arith.constant 0 : i32
    %c0_i32_1 = arith.constant 0 : i32
    return %c0_i32, %c0_i32_0 : i32, i32
  }
  func.func @transform_3(%arg0: i32) -> (i32, i32) {
    %c0_i32 = arith.constant 0 : i32
    %c0_i32_0 = arith.constant 0 : i32
    %c0_i32_1 = arith.constant 0 : i32
    return %c0_i32, %c0_i32_0 : i32, i32
  }
  func.func @transform_4(%arg0: i32) -> (i32, i32) {
    %c0_i32 = arith.constant 0 : i32
    %c0_i32_0 = arith.constant 0 : i32
    %c0_i32_1 = arith.constant 0 : i32
    return %c0_i32, %c0_i32_0 : i32, i32
  }
  func.func @transform_5(%arg0: i32) -> (i32, i32) {
    %c0_i32 = arith.constant 0 : i32
    %c0_i32_0 = arith.constant 0 : i32
    return %arg0, %c0_i32 : i32, i32
  }
}

</mosaic_0001>

<bundles_post_ra>
// kernel: tpu_custom_call.1
= control target key start
LH: loop header
LB: loop body
LE: loop exit
PB: predicated region body
PF: predicated region fallthrough
CT: control target
= control target key end

     0   :  { %10 = vsyncpa [#allocation3], 0  ;;  %s397_s0 = inlined_call_operand.hbm [shape: f32[8,16], index: 0, kind: input, shape index: {}]   ;;  %s398_s1 = inlined_call_operand.hbm [shape: f32[8,64], index: 1, kind: input, shape index: {}]   ;;  %s399_s2 = inlined_call_operand.hbm [shape: f32[16,128], index: 2, kind: input, shape index: {}]   ;;  %s400_s3 = inlined_call_operand.hbm [shape: f32[32,128], index: 3, kind: input, shape index: {}]   ;;  %s401_s4 = inlined_call_operand.vmem [shape: f32[1,128], index: 4, kind: input, shape index: {}]   ;;  %s402_s5 = inlined_call_operand.hbm [shape: f32[8,64], index: 5, kind: output, shape index: {}]  }
   0x1   :  { %11 = vsyncpa [#allocation6], 0 }
   0x2   :  { %12 = vsyncpa [#allocation9], 0  ;;  %s30_s20 = sshll.u32 %s398_s1, 4  ;;  %s31_s20 = int_to_ptr.hbm [resolvable:$true] %s30_s20 }
   0x3   :  { %13 = vsyncpa [#allocation4], 0  ;;  %s338_s21 = smov [#allocation5]   ;;  %s19_s25 = sshll.u32 %s397_s0, 4  ;;  %s20_s25 = int_to_ptr.hbm [resolvable:$true] %s19_s25 }
   0x4   :  { %s32_s22 = sshll.u32 %s338_s21, 4  ;;  %s339_s26 = smov [#allocation2]   ;;  %s33_s22 = int_to_ptr.vmem [resolvable:$true] %s32_s22 }
   0x5   :  { %35 = dma.hbm_to_vmem [thread:$0]  %s31_s20, 128, %s33_s22, [#allocation6]  }
   0x6   :  { %s21_s27 = sshll.u32 %s339_s26, 4  ;;  %s40_s30 = sshll.u32 %s399_s2, 4  ;;  %s22_s27 = int_to_ptr.vmem [resolvable:$true] %s21_s27  ;;  %s41_s30 = int_to_ptr.hbm [resolvable:$true] %s40_s30 }
   0x7   :  { %24 = dma.hbm_to_vmem [thread:$0]  %s20_s25, 128, %s22_s27, [#allocation3]  }
   0x8   :  { %s340_s1 = smov [#allocation7]   ;;  %s53_s9 = sshll.u32 %s400_s3, 4  ;;  %s54_s9 = int_to_ptr.hbm [resolvable:$true] %s53_s9 }
   0x9   :  { %s42_s6 = sshll.u32 %s340_s1, 4  ;;  %s341_s10 = smov 128   ;;  %s43_s6 = int_to_ptr.vmem [resolvable:$true] %s42_s6 }
   0xa   :  { %s342_s0 = smov 8   ;;  %s343_s11 = smov [#allocation8]  }
   0xb   :  { %48 = dma.hbm_to_vmem [thread:$0]  %s41_s30, 256, %s43_s6, [#allocation6], %s341_s10, %s341_s10, %s342_s0  }
   0xc   :  { %s55_s12 = sshll.u32 %s343_s11, 4  ;;  %s56_s12 = int_to_ptr.vmem [resolvable:$true] %s55_s12 }
   0xd   :  { %61 = dma.hbm_to_vmem [thread:$0]  %s54_s9, 512, %s56_s12, [#allocation9], %s341_s10, %s341_s10, %s342_s0  }
   0xe   :  { %330 = dma.done.wait [#allocation3], 128  }
   0xf   :  { %331 = vsyncadd [#allocation3], 4294967168 }
  0x10   :  { %332 = dma.done.wait [#allocation6], 384  }
  0x11   :  { %333 = vsyncadd [#allocation6], 4294966912 }
  0x12   :  { %334 = dma.done.wait [#allocation9], 512  }
  0x13   :  { %335 = vsyncadd [#allocation9], 4294966784  ;;  %v87_v0 = vld [vmem:[#allocation8 + $0x18] sm:$0xff]  ;;  %v86_v1 = vld [vmem:[#allocation8 + $0x10] sm:$0xff]  ;;  %vm112_vm0 = vcmask 130048   ;;  %vm88_vm1 = vcmask 261120  }
  0x14   :  { %104 = vmatpush.msra.mxu0 %v87_v0  ;;  %v83_v2 = vld [vmem:[#allocation7 + $0x8] sm:$0xff]  ;;  %v82_v3 = vld [vmem:[#allocation7] sm:$0xff]  ;;  %v85_v4 = vld [vmem:[#allocation8 + $0x8] sm:$0xff]  ;;  %s344_s13 = smov 96   ;;  %s346_s14 = smov [#allocation10]   ;;  %vm173_vm2 = vcmask 523264  }
  0x15   :  { %130 = vmatpush.msra.mxu1 %v83_v2  ;;  %v80_v5 = vld [vmem:[#allocation2] sm:$0xff]  ;;  %v81_v7 = vld [vmem:[#allocation5] sm:$0xff]  ;;  %s180_s15 = sshll.u32 %s346_s14, 4  ;;  %s182_s18 = sshll.u32 %s402_s5, 4  ;;  %s181_s15 = int_to_ptr.vmem [resolvable:$true] %s180_s15  ;;  %s183_s18 = int_to_ptr.hbm [resolvable:$true] %s182_s18 }
  0x16   :  { %105 = vmatpush.msra.mxu0 %v86_v1  ;;  %v84_v6 = vld [vmem:[#allocation8] sm:$0xff] }
  0x17   :  { %131 = vmatpush.msra.mxu1 %v82_v3  ;;  %v205_v9 = vld [vmem:[%s401_s4] ss:$0 sm:$0xff]  ;;  %s345_s4 = smov 32  }
  0x18   :  { %106 = vmatpush.msra.mxu0 %v85_v4  ;;  %195 = vmatmul.msk.f32.vlgmr.msra.gmra.mxu1 %vm112_vm0, %v80_v5 }
  0x1a   :  { %107 = vmatpush.msra.mxu0 %v84_v6 }
  0x1b   :  { %194 = vmatmul.msk.f32.vlgmr.msra.gmra.mxu0 %vm88_vm1, %v81_v7 }
  0x95   :  { %v133_v8 = vpop.f32.mrf.mxu1 }
  0x98   :  { %v109_v10 = vpop.f32.mrf.mxu0 }
  0x99   :  { %v134_v11 = vadd.f32 %v133_v8, %v109_v10 }
  0x9b   :  { %v140_v12 = vadd.f32 %v205_v9, %v134_v11 }
  0x9d   :  { %206 = vtanh.f32 %v140_v12 }
  0xa3   :  { %v207_v13 = vpop.eup %206 }
  0xa4   :  { %149 = vrot.lane.b32.xlu0 %v207_v13, %s344_s13  ;;  %v142_v14 = vmul.f32 0.5, %v207_v13 }
  0xa6   :  { %v143_v15 = vadd.f32 0.5, %v142_v14 }
  0xac   :  { %144 = vrot.lane.b32.xlu0 %v81_v7, %s344_s13 }
 0x116   :  { %v150_v16 = vpop.permute.xlu0 %149 }
 0x117   :  { %v152_v17 = vmul.f32 %v150_v16, %v143_v15 }
 0x119   :  { %154 = vrot.lane.b32.xlu1 %v152_v17, %s344_s13 }
 0x11e   :  { %v145_v18 = vpop.permute.xlu0 %144 }
 0x11f   :  { %v147_v19 = vmul.f32 %v145_v18, %v143_v15 }
 0x18b   :  { %v155_v20 = vpop.permute.xlu1 %154 }
 0x18c   :  { %v157_v21 = vadd.f32 %v155_v20, %v147_v19 }
 0x18e   :  { %208 = vtanh.f32 %v157_v21 }
 0x194   :  { %v209_v22 = vpop.eup %208 }
 0x195   :  { %160 = vrot.lane.b32.xlu1 %v209_v22, %s344_s13 }
 0x207   :  { %v161_v23 = vpop.permute.xlu1 %160 }
 0x208   :  { %v163_v24 = vmul.f32 %v161_v23, %v143_v15 }
 0x20a   :  { %165 = vrot.lane.b32.xlu2 %v163_v24, %s345_s4 }
 0x212   :  { %169 = vrot.lane.b32.xlu2 %v157_v21, %s345_s4 }
 0x264   :  { %v166_v25 = vpop.permute.xlu2 %165 }
 0x26c   :  { %v170_v26 = vpop.permute.xlu2 %169 }
 0x26d   :  { %v172_v27 = vsel %vm88_vm1, %v166_v25, %v170_v26 }
 0x26e   :  { %174 = vst.msk [vmem:[#allocation10] sm:$0xff] %vm173_vm2, %v172_v27 }
 0x26f   :  { %185 = dma.vmem_to_hbm [thread:$0]  %s181_s15, 128, %s183_s18, [#allocation4]  }
 0x270   :  { %336 = dma.done.wait [#allocation4], 128  }
 0x271   :  { %337 = vsyncadd [#allocation4], 4294967168 }
 0x272   :  { %190 = vsyncpa [#allocation3], 1 }
 0x273   :  { %191 = vsyncpa [#allocation6], 1 }
 0x274   :  { %192 = vsyncpa [#allocation9], 1 }
 0x275   :  { %193 = vsyncpa [#allocation4], 1 }

</bundles_post_ra>
